<compile_context>
chip_gen: v7x
topology: tpu7x:2x2x1
jax: 0.10.0
libtpu: 0.0.40
codegen_flags: <defaults>
</compile_context>

<pallas_src>
import functools

import jax
import jax.numpy as jnp
from jax import lax
from jax.experimental import pallas as pl
from jax.experimental.pallas import tpu as pltpu


# Row offsets of each layer's slab inside the packed weight/bias buffers
# (all starts are multiples of 8 so in-kernel slices are sublane-aligned).
_W1_OFF, _W2_OFF, _FC1_OFF, _FC2_OFF, _FC3_OFF = 0, 8, 24, 144, 232
_PACK_ROWS, _PACK_COLS = 248, 256


# ----------------------------------------------------------------------------
# Fused Pallas kernel: conv1+tanh+pool1 -> conv2+tanh -> (pool2+flatten+fc1)
#                      +tanh -> fc2+tanh -> fc3
# ----------------------------------------------------------------------------
def _studentnet_kernel(p1_ref, w_ref, b_ref, out_ref, *, batch):
    f32, bf16 = jnp.float32, jnp.bfloat16
    n = batch
    L1 = 81 * n          # pooled1 lanes: (ph*9+pw)*n + b,  ph,pw in 0..8
    W2WIN = 31 * n       # conv2 acc width: covers (h2*9+w2)*n + b, h2,w2 in 0..3

    # ---- Conv1(1->6, k=10) + Tanh + AvgPool(2,2): ONE matmul over 4 parities -
    # p1 already holds the im2col patches at the pool-sampled positions,
    # with the 4 pooling parities concatenated along lanes.
    w1 = w_ref[_W1_OFF:_W1_OFF + 8, 0:100]                 # (8,100) bf16 (rows 6,7 zero)
    b1 = b_ref[_W1_OFF:_W1_OFF + 8, :]                     # (8,1)   f32
    z1 = jnp.dot(w1, p1_ref[...], preferred_element_type=f32)   # (8, 4*81n)
    t1 = jnp.tanh(z1 + b1)
    pooled1 = 0.25 * (t1[:, 0:L1] + t1[:, L1:2 * L1]
                      + t1[:, 2 * L1:3 * L1] + t1[:, 3 * L1:4 * L1])
    pooled1 = pooled1.astype(bf16)                         # (8, 81n) cast ONCE

    # ---- Conv2(6->16, k=5) + Tanh: pack the 25 shifted windows along the -----
    # contraction axis (8-row channel-padded chunks) -> ONE MXU matmul.
    wins = [pooled1[:, n * (ki * 9 + kj): n * (ki * 9 + kj) + W2WIN]
            for ki in range(5) for kj in range(5)]
    stack2 = jnp.concatenate(wins, axis=0)                 # (200, 31n) bf16
    w2 = w_ref[_W2_OFF:_W2_OFF + 16, 0:200]                # (16, 200) bf16
    b2 = b_ref[_W2_OFF:_W2_OFF + 16, :]                    # (16, 1)   f32
    t2 = jnp.tanh(jnp.dot(w2, stack2, preferred_element_type=f32) + b2)
    t2 = t2.astype(bf16)                                   # (16, 31n) cast ONCE
    # Only lanes n*(h2*9+w2)+b with h2,w2<=3 are meaningful; the rest is finite
    # filler and is never read below.

    # ---- AvgPool(2,2) + Flatten + Linear(64,120): 16 column groups packed ----
    # along the contraction axis -> ONE (120,256)x(256,n) MXU matmul.
    grps = [t2[:, n * (h2 * 9 + w2): n * (h2 * 9 + w2) + n]
            for h2 in range(4) for w2 in range(4)]
    stackf = jnp.concatenate(grps, axis=0)                 # (256, n) bf16
    wfc1 = w_ref[_FC1_OFF:_FC1_OFF + 120, 0:256]
    bfc1 = b_ref[_FC1_OFF:_FC1_OFF + 120, :]
    a1 = jnp.tanh(jnp.dot(wfc1, stackf, preferred_element_type=f32) + bfc1)  # (120,n)

    # ---- Linear(120,84) + Tanh, Linear(84,10) --------------------------------
    wfc2 = w_ref[_FC2_OFF:_FC2_OFF + 84, 0:120]
    bfc2 = b_ref[_FC2_OFF:_FC2_OFF + 84, :]
    a2 = jnp.tanh(jnp.dot(wfc2, a1.astype(bf16), preferred_element_type=f32) + bfc2)
    wfc3 = w_ref[_FC3_OFF:_FC3_OFF + 10, 0:84]
    bfc3 = b_ref[_FC3_OFF:_FC3_OFF + 10, :]
    out_ref[...] = jnp.dot(wfc3, a2.astype(bf16), preferred_element_type=f32) + bfc3


# ----------------------------------------------------------------------------
# Wrapper-side glue: conv1 patches (jitted, per-call) + weight packing (once)
# ----------------------------------------------------------------------------
def _conv1_pool1_patches(x_nchw):
    """(N,1,28,28) f32 -> (100, 4*81*N) bf16 conv1 im2col patches.

    Column layout: p*81N + (ph*9+pw)*N + b, with pooling parity p = dh*2+dw:
      p1[ki*10+kj, ...] = x[b, 0, 2*ph+dh+ki, 2*pw+dw+kj]
    i.e. patches only at the positions AvgPool(2,2) (floor mode) needs.
    One stride-2 conv_general_dilated_patches per parity (no 100-slice loop).
    """
    n = x_nchw.shape[0]
    xs = x_nchw.astype(jnp.float32)
    parities = []
    for dh in range(2):
        for dw in range(2):
            pat = lax.conv_general_dilated_patches(
                xs[:, :, dh:dh + 27, dw:dw + 27],
                filter_shape=(10, 10), window_strides=(2, 2),
                padding="VALID")                               # (N, 100, 9, 9)
            pat = jnp.transpose(pat, (1, 2, 3, 0)).reshape(100, 81 * n)
            parities.append(pat)
    return jnp.concatenate(parities, axis=-1).astype(jnp.bfloat16)


def pack_params(params):
    """Pack the 10 PyTorch-layout tensors into ONE bf16 weight buffer plus ONE
    f32 bias buffer.  Call ONCE (outside the per-forward jit path).
    Pool2 + Flatten are folded into the fc1 weights; conv2 taps are packed
    along the contraction axis in 8-row (channel-padded) groups."""
    f32 = jnp.float32
    w = jnp.zeros((_PACK_ROWS, _PACK_COLS), f32)
    b = jnp.zeros((_PACK_ROWS, 1), f32)

    # conv1: (6,1,10,10) -> (6,100), tap index k = ki*10 + kj
    w = w.at[_W1_OFF:_W1_OFF + 6, 0:100].set(params["conv1_w"].reshape(6, 100))
    b = b.at[_W1_OFF:_W1_OFF + 6, 0].set(params["conv1_b"])

    # conv2: (16,6,5,5) -> (16,200), column = 8*(ki*5+kj) + c (channels padded to 8)
    c2 = jnp.transpose(params["conv2_w"], (0, 2, 3, 1))        # (16,5,5,6) [o,ki,kj,c]
    c2 = jnp.pad(c2, ((0, 0), (0, 0), (0, 0), (0, 2)))         # (16,5,5,8)
    w = w.at[_W2_OFF:_W2_OFF + 16, 0:200].set(c2.reshape(16, 200))
    b = b.at[_W2_OFF:_W2_OFF + 16, 0].set(params["conv2_b"])

    # fc1 folded with pool2: (120,64) -> (120,256), column = 16*(h2*4+w2) + o
    fc1 = params["fc1_w"].reshape(120, 16, 2, 2)               # [j, o, qh, qw]
    wfc1 = jnp.concatenate(
        [0.25 * fc1[:, :, h2 // 2, w2 // 2]
         for h2 in range(4) for w2 in range(4)], axis=1)       # (120, 256)
    w = w.at[_FC1_OFF:_FC1_OFF + 120, 0:256].set(wfc1)
    b = b.at[_FC1_OFF:_FC1_OFF + 120, 0].set(params["fc1_b"])

    # fc2 / fc3
    w = w.at[_FC2_OFF:_FC2_OFF + 84, 0:120].set(params["fc2_w"])
    b = b.at[_FC2_OFF:_FC2_OFF + 84, 0].set(params["fc2_b"])
    w = w.at[_FC3_OFF:_FC3_OFF + 10, 0:84].set(params["fc3_w"])
    b = b.at[_FC3_OFF:_FC3_OFF + 10, 0].set(params["fc3_b"])

    return w.astype(jnp.bfloat16), b


@jax.jit
def studentnet_forward(x_nchw, w_packed, b_packed):
    """x_nchw: (N,1,28,28) f32, packed params from pack_params -> (N,10) logits."""
    n = x_nchw.shape[0]
    p1 = _conv1_pool1_patches(x_nchw)
    vmem = pl.BlockSpec(memory_space=pltpu.MemorySpace.VMEM)
    # TODO(synk): for large batches add a 128-wide batch grid axis marked
    # "parallel" (needed to use both v7x TensorCores and to stay inside its
    # 64 MiB VMEM); at batch=2 a single gridless invocation is optimal.
    out_t = pl.pallas_call(
        functools.partial(_studentnet_kernel, batch=n),
        out_shape=jax.ShapeDtypeStruct((10, n), jnp.float32),
        in_specs=[vmem, vmem, vmem],
        out_specs=vmem,
    )(p1, w_packed, b_packed)
    return out_t.T                                             # (N, 10)


# ----------------------------------------------------------------------------
# Parameter construction (deterministic synthetic init, PyTorch shapes)
# ----------------------------------------------------------------------------
def init_params(key):
    ks = jax.random.split(key, 10)

    def u(k, shape, fan_in):
        bound = 1.0 / jnp.sqrt(fan_in)
        return jax.random.uniform(k, shape, jnp.float32, -bound, bound)

    return {
        "conv1_w": u(ks[0], (6, 1, 10, 10), 1 * 10 * 10),
        "conv1_b": u(ks[1], (6,), 1 * 10 * 10),
        "conv2_w": u(ks[2], (16, 6, 5, 5), 6 * 5 * 5),
        "conv2_b": u(ks[3], (16,), 6 * 5 * 5),
        "fc1_w": u(ks[4], (120, 64), 64),
        "fc1_b": u(ks[5], (120,), 64),
        "fc2_w": u(ks[6], (84, 120), 120),
        "fc2_b": u(ks[7], (84,), 120),
        "fc3_w": u(ks[8], (10, 84), 84),
        "fc3_b": u(ks[9], (10,), 84),
    }


# ----------------------------------------------------------------------------
# Pure-JAX reference (self-check of the fused kernel)
# ----------------------------------------------------------------------------
def _reference_forward(x_nchw, params):
    f32 = jnp.float32
    x = x_nchw.astype(f32)
    n = x.shape[0]
    dn = ("NCHW", "OIHW", "NCHW")

    def avgpool2(y):
        _, c, h, w = y.shape
        y = y[:, :, : 2 * (h // 2), : 2 * (w // 2)]
        y = y.reshape(n, c, h // 2, 2, w // 2, 2)
        return y.mean(axis=(3, 5))

    y = lax.conv_general_dilated(x, params["conv1_w"].astype(f32),
                                 (1, 1), "VALID", dimension_numbers=dn)
    y = avgpool2(jnp.tanh(y + params["conv1_b"].reshape(1, 6, 1, 1)))
    y = lax.conv_general_dilated(y, params["conv2_w"].astype(f32),
                                 (1, 1), "VALID", dimension_numbers=dn)
    y = avgpool2(jnp.tanh(y + params["conv2_b"].reshape(1, 16, 1, 1)))
    y = y.reshape(n, 16 * 2 * 2)
    y = jnp.tanh(y @ params["fc1_w"].T + params["fc1_b"])
    y = jnp.tanh(y @ params["fc2_w"].T + params["fc2_b"])
    return y @ params["fc3_w"].T + params["fc3_b"]


if __name__ == "__main__":
    key = jax.random.PRNGKey(0)
    k_x, k_p = jax.random.split(key)
    # MNIST-shaped input: batch=2, 1 channel, 28x28 (the Linear(16*2*2, 120)
    # in the spec pins the spatial size to 28x28).
    x = jax.random.normal(k_x, (2, 1, 28, 28), dtype=jnp.float32)
    params = init_params(k_p)
    w_packed, b_packed = pack_params(params)   # pack weights ONCE, outside the hot path

    logits = studentnet_forward(x, w_packed, b_packed)
    jax.block_until_ready(logits)
    assert logits.shape == (2, 10)

    ref = _reference_forward(x, params)
    max_err = jnp.max(jnp.abs(logits - ref))
    assert jnp.allclose(logits, ref, atol=5e-2, rtol=5e-2), f"max abs err {max_err}"

    print("KERNEL_OK")
</pallas_src>

<mosaic_0001>
module attributes {stable_mosaic.version = 11 : i64} {
  func.func @_studentnet_kernel(%arg0: memref<100x648xbf16, #tpu.memory_space<vmem>>, %arg1: memref<248x256xbf16, #tpu.memory_space<vmem>>, %arg2: memref<248x1xf32, #tpu.memory_space<vmem>>, %arg3: memref<10x2xf32, #tpu.memory_space<vmem>>) attributes {dimension_semantics = [], scalar_prefetch = 0 : i64, scratch_operands = 0 : i64, tpu.core_type = #tpu.core_type<tc>} {
    %c0 = arith.constant 0 : index
    %c0_0 = arith.constant 0 : index
    %0 = vector.load %arg1[%c0, %c0_0] : memref<248x256xbf16, #tpu.memory_space<vmem>>, vector<8x100xbf16>
    %c0_1 = arith.constant 0 : index
    %c0_2 = arith.constant 0 : index
    %1 = vector.load %arg2[%c0_1, %c0_2] : memref<248x1xf32, #tpu.memory_space<vmem>>, vector<8x1xf32>
    %c0_3 = arith.constant 0 : index
    %c0_4 = arith.constant 0 : index
    %2 = vector.load %arg0[%c0_3, %c0_4] : memref<100x648xbf16, #tpu.memory_space<vmem>>, vector<100x648xbf16>
    %cst = arith.constant dense<0.000000e+00> : vector<8x648xf32>
    %3 = tpu.matmul %0, %2, %cst {dimension_numbers = #tpu.dot_dimension_numbers<[1], [0], [0], [1], [0, 0, 1, 1], [], []>} : vector<8x100xbf16>, vector<100x648xbf16>, vector<8x648xf32> -> vector<8x648xf32>
    %4 = vector.broadcast %1 : vector<8x1xf32> to vector<8x648xf32>
    %5 = arith.addf %3, %4 : vector<8x648xf32>
    %6 = math.tanh %5 : vector<8x648xf32>
    %7 = vector.extract_strided_slice %6 {offsets = [0, 0], sizes = [8, 162], strides = [1, 1]} : vector<8x648xf32> to vector<8x162xf32>
    %8 = vector.extract_strided_slice %6 {offsets = [0, 162], sizes = [8, 162], strides = [1, 1]} : vector<8x648xf32> to vector<8x162xf32>
    %9 = arith.addf %7, %8 : vector<8x162xf32>
    %10 = vector.extract_strided_slice %6 {offsets = [0, 324], sizes = [8, 162], strides = [1, 1]} : vector<8x648xf32> to vector<8x162xf32>
    %11 = arith.addf %9, %10 : vector<8x162xf32>
    %12 = vector.extract_strided_slice %6 {offsets = [0, 486], sizes = [8, 162], strides = [1, 1]} : vector<8x648xf32> to vector<8x162xf32>
    %13 = arith.addf %11, %12 : vector<8x162xf32>
    %cst_5 = arith.constant 2.500000e-01 : f32
    %14 = vector.broadcast %cst_5 : f32 to vector<8x162xf32>
    %15 = arith.mulf %14, %13 : vector<8x162xf32>
    %16 = arith.truncf %15 : vector<8x162xf32> to vector<8x162xbf16>
    %17 = vector.extract_strided_slice %16 {offsets = [0, 0], sizes = [8, 62], strides = [1, 1]} : vector<8x162xbf16> to vector<8x62xbf16>
    %18 = vector.extract_strided_slice %16 {offsets = [0, 2], sizes = [8, 62], strides = [1, 1]} : vector<8x162xbf16> to vector<8x62xbf16>
    %19 = vector.extract_strided_slice %16 {offsets = [0, 4], sizes = [8, 62], strides = [1, 1]} : vector<8x162xbf16> to vector<8x62xbf16>
    %20 = vector.extract_strided_slice %16 {offsets = [0, 6], sizes = [8, 62], strides = [1, 1]} : vector<8x162xbf16> to vector<8x62xbf16>
    %21 = vector.extract_strided_slice %16 {offsets = [0, 8], sizes = [8, 62], strides = [1, 1]} : vector<8x162xbf16> to vector<8x62xbf16>
    %22 = vector.extract_strided_slice %16 {offsets = [0, 18], sizes = [8, 62], strides = [1, 1]} : vector<8x162xbf16> to vector<8x62xbf16>
    %23 = vector.extract_strided_slice %16 {offsets = [0, 20], sizes = [8, 62], strides = [1, 1]} : vector<8x162xbf16> to vector<8x62xbf16>
    %24 = vector.extract_strided_slice %16 {offsets = [0, 22], sizes = [8, 62], strides = [1, 1]} : vector<8x162xbf16> to vector<8x62xbf16>
    %25 = vector.extract_strided_slice %16 {offsets = [0, 24], sizes = [8, 62], strides = [1, 1]} : vector<8x162xbf16> to vector<8x62xbf16>
    %26 = vector.extract_strided_slice %16 {offsets = [0, 26], sizes = [8, 62], strides = [1, 1]} : vector<8x162xbf16> to vector<8x62xbf16>
    %27 = vector.extract_strided_slice %16 {offsets = [0, 36], sizes = [8, 62], strides = [1, 1]} : vector<8x162xbf16> to vector<8x62xbf16>
    %28 = vector.extract_strided_slice %16 {offsets = [0, 38], sizes = [8, 62], strides = [1, 1]} : vector<8x162xbf16> to vector<8x62xbf16>
    %29 = vector.extract_strided_slice %16 {offsets = [0, 40], sizes = [8, 62], strides = [1, 1]} : vector<8x162xbf16> to vector<8x62xbf16>
    %30 = vector.extract_strided_slice %16 {offsets = [0, 42], sizes = [8, 62], strides = [1, 1]} : vector<8x162xbf16> to vector<8x62xbf16>
    %31 = vector.extract_strided_slice %16 {offsets = [0, 44], sizes = [8, 62], strides = [1, 1]} : vector<8x162xbf16> to vector<8x62xbf16>
    %32 = vector.extract_strided_slice %16 {offsets = [0, 54], sizes = [8, 62], strides = [1, 1]} : vector<8x162xbf16> to vector<8x62xbf16>
    %33 = vector.extract_strided_slice %16 {offsets = [0, 56], sizes = [8, 62], strides = [1, 1]} : vector<8x162xbf16> to vector<8x62xbf16>
    %34 = vector.extract_strided_slice %16 {offsets = [0, 58], sizes = [8, 62], strides = [1, 1]} : vector<8x162xbf16> to vector<8x62xbf16>
    %35 = vector.extract_strided_slice %16 {offsets = [0, 60], sizes = [8, 62], strides = [1, 1]} : vector<8x162xbf16> to vector<8x62xbf16>
    %36 = vector.extract_strided_slice %16 {offsets = [0, 62], sizes = [8, 62], strides = [1, 1]} : vector<8x162xbf16> to vector<8x62xbf16>
    %37 = vector.extract_strided_slice %16 {offsets = [0, 72], sizes = [8, 62], strides = [1, 1]} : vector<8x162xbf16> to vector<8x62xbf16>
    %38 = vector.extract_strided_slice %16 {offsets = [0, 74], sizes = [8, 62], strides = [1, 1]} : vector<8x162xbf16> to vector<8x62xbf16>
    %39 = vector.extract_strided_slice %16 {offsets = [0, 76], sizes = [8, 62], strides = [1, 1]} : vector<8x162xbf16> to vector<8x62xbf16>
    %40 = vector.extract_strided_slice %16 {offsets = [0, 78], sizes = [8, 62], strides = [1, 1]} : vector<8x162xbf16> to vector<8x62xbf16>
    %41 = vector.extract_strided_slice %16 {offsets = [0, 80], sizes = [8, 62], strides = [1, 1]} : vector<8x162xbf16> to vector<8x62xbf16>
    %42 = tpu.concatenate %17, %18, %19, %20, %21, %22, %23, %24, %25, %26, %27, %28, %29, %30, %31, %32 in 0 : vector<8x62xbf16>, vector<8x62xbf16>, vector<8x62xbf16>, vector<8x62xbf16>, vector<8x62xbf16>, vector<8x62xbf16>, vector<8x62xbf16>, vector<8x62xbf16>, vector<8x62xbf16>, vector<8x62xbf16>, vector<8x62xbf16>, vector<8x62xbf16>, vector<8x62xbf16>, vector<8x62xbf16>, vector<8x62xbf16>, vector<8x62xbf16> -> vector<128x62xbf16>
    %43 = tpu.concatenate %33, %34, %35, %36, %37, %38, %39, %40, %41 in 0 : vector<8x62xbf16>, vector<8x62xbf16>, vector<8x62xbf16>, vector<8x62xbf16>, vector<8x62xbf16>, vector<8x62xbf16>, vector<8x62xbf16>, vector<8x62xbf16>, vector<8x62xbf16> -> vector<72x62xbf16>
    %44 = tpu.concatenate %42, %43 in 0 : vector<128x62xbf16>, vector<72x62xbf16> -> vector<200x62xbf16>
    %c8 = arith.constant 8 : index
    %c0_6 = arith.constant 0 : index
    %45 = vector.load %arg1[%c8, %c0_6] : memref<248x256xbf16, #tpu.memory_space<vmem>>, vector<16x200xbf16>
    %c8_7 = arith.constant 8 : index
    %c0_8 = arith.constant 0 : index
    %46 = vector.load %arg2[%c8_7, %c0_8] : memref<248x1xf32, #tpu.memory_space<vmem>>, vector<16x1xf32>
    %cst_9 = arith.constant dense<0.000000e+00> : vector<16x62xf32>
    %47 = tpu.matmul %45, %44, %cst_9 {dimension_numbers = #tpu.dot_dimension_numbers<[1], [0], [0], [1], [0, 0, 1, 1], [], []>} : vector<16x200xbf16>, vector<200x62xbf16>, vector<16x62xf32> -> vector<16x62xf32>
    %48 = vector.broadcast %46 : vector<16x1xf32> to vector<16x62xf32>
    %49 = arith.addf %47, %48 : vector<16x62xf32>
    %50 = math.tanh %49 : vector<16x62xf32>
    %51 = arith.truncf %50 : vector<16x62xf32> to vector<16x62xbf16>
    %52 = vector.extract_strided_slice %51 {offsets = [0, 0], sizes = [16, 2], strides = [1, 1]} : vector<16x62xbf16> to vector<16x2xbf16>
    %53 = vector.extract_strided_slice %51 {offsets = [0, 2], sizes = [16, 2], strides = [1, 1]} : vector<16x62xbf16> to vector<16x2xbf16>
    %54 = vector.extract_strided_slice %51 {offsets = [0, 4], sizes = [16, 2], strides = [1, 1]} : vector<16x62xbf16> to vector<16x2xbf16>
    %55 = vector.extract_strided_slice %51 {offsets = [0, 6], sizes = [16, 2], strides = [1, 1]} : vector<16x62xbf16> to vector<16x2xbf16>
    %56 = vector.extract_strided_slice %51 {offsets = [0, 18], sizes = [16, 2], strides = [1, 1]} : vector<16x62xbf16> to vector<16x2xbf16>
    %57 = vector.extract_strided_slice %51 {offsets = [0, 20], sizes = [16, 2], strides = [1, 1]} : vector<16x62xbf16> to vector<16x2xbf16>
    %58 = vector.extract_strided_slice %51 {offsets = [0, 22], sizes = [16, 2], strides = [1, 1]} : vector<16x62xbf16> to vector<16x2xbf16>
    %59 = vector.extract_strided_slice %51 {offsets = [0, 24], sizes = [16, 2], strides = [1, 1]} : vector<16x62xbf16> to vector<16x2xbf16>
    %60 = vector.extract_strided_slice %51 {offsets = [0, 36], sizes = [16, 2], strides = [1, 1]} : vector<16x62xbf16> to vector<16x2xbf16>
    %61 = vector.extract_strided_slice %51 {offsets = [0, 38], sizes = [16, 2], strides = [1, 1]} : vector<16x62xbf16> to vector<16x2xbf16>
    %62 = vector.extract_strided_slice %51 {offsets = [0, 40], sizes = [16, 2], strides = [1, 1]} : vector<16x62xbf16> to vector<16x2xbf16>
    %63 = vector.extract_strided_slice %51 {offsets = [0, 42], sizes = [16, 2], strides = [1, 1]} : vector<16x62xbf16> to vector<16x2xbf16>
    %64 = vector.extract_strided_slice %51 {offsets = [0, 54], sizes = [16, 2], strides = [1, 1]} : vector<16x62xbf16> to vector<16x2xbf16>
    %65 = vector.extract_strided_slice %51 {offsets = [0, 56], sizes = [16, 2], strides = [1, 1]} : vector<16x62xbf16> to vector<16x2xbf16>
    %66 = vector.extract_strided_slice %51 {offsets = [0, 58], sizes = [16, 2], strides = [1, 1]} : vector<16x62xbf16> to vector<16x2xbf16>
    %67 = vector.extract_strided_slice %51 {offsets = [0, 60], sizes = [16, 2], strides = [1, 1]} : vector<16x62xbf16> to vector<16x2xbf16>
    %68 = tpu.concatenate %52, %53, %54, %55, %56, %57, %58, %59, %60, %61, %62, %63, %64, %65, %66, %67 in 0 : vector<16x2xbf16>, vector<16x2xbf16>, vector<16x2xbf16>, vector<16x2xbf16>, vector<16x2xbf16>, vector<16x2xbf16>, vector<16x2xbf16>, vector<16x2xbf16>, vector<16x2xbf16>, vector<16x2xbf16>, vector<16x2xbf16>, vector<16x2xbf16>, vector<16x2xbf16>, vector<16x2xbf16>, vector<16x2xbf16>, vector<16x2xbf16> -> vector<256x2xbf16>
    %c24 = arith.constant 24 : index
    %c0_10 = arith.constant 0 : index
    %69 = vector.load %arg1[%c24, %c0_10] : memref<248x256xbf16, #tpu.memory_space<vmem>>, vector<120x256xbf16>
    %c24_11 = arith.constant 24 : index
    %c0_12 = arith.constant 0 : index
    %70 = vector.load %arg2[%c24_11, %c0_12] : memref<248x1xf32, #tpu.memory_space<vmem>>, vector<120x1xf32>
    %cst_13 = arith.constant dense<0.000000e+00> : vector<120x2xf32>
    %71 = tpu.matmul %69, %68, %cst_13 {dimension_numbers = #tpu.dot_dimension_numbers<[1], [0], [0], [1], [0, 0, 1, 1], [], []>} : vector<120x256xbf16>, vector<256x2xbf16>, vector<120x2xf32> -> vector<120x2xf32>
    %72 = vector.broadcast %70 : vector<120x1xf32> to vector<120x2xf32>
    %73 = arith.addf %71, %72 : vector<120x2xf32>
    %74 = math.tanh %73 : vector<120x2xf32>
    %c144 = arith.constant 144 : index
    %c0_14 = arith.constant 0 : index
    %75 = vector.load %arg1[%c144, %c0_14] : memref<248x256xbf16, #tpu.memory_space<vmem>>, vector<84x120xbf16>
    %c144_15 = arith.constant 144 : index
    %c0_16 = arith.constant 0 : index
    %76 = vector.load %arg2[%c144_15, %c0_16] : memref<248x1xf32, #tpu.memory_space<vmem>>, vector<84x1xf32>
    %77 = arith.truncf %74 : vector<120x2xf32> to vector<120x2xbf16>
    %cst_17 = arith.constant dense<0.000000e+00> : vector<84x2xf32>
    %78 = tpu.matmul %75, %77, %cst_17 {dimension_numbers = #tpu.dot_dimension_numbers<[1], [0], [0], [1], [0, 0, 1, 1], [], []>} : vector<84x120xbf16>, vector<120x2xbf16>, vector<84x2xf32> -> vector<84x2xf32>
    %79 = vector.broadcast %76 : vector<84x1xf32> to vector<84x2xf32>
    %80 = arith.addf %78, %79 : vector<84x2xf32>
    %81 = math.tanh %80 : vector<84x2xf32>
    %c232 = arith.constant 232 : index
    %c0_18 = arith.constant 0 : index
    %82 = vector.load %arg1[%c232, %c0_18] : memref<248x256xbf16, #tpu.memory_space<vmem>>, vector<10x84xbf16>
    %c232_19 = arith.constant 232 : index
    %c0_20 = arith.constant 0 : index
    %83 = vector.load %arg2[%c232_19, %c0_20] : memref<248x1xf32, #tpu.memory_space<vmem>>, vector<10x1xf32>
    %84 = arith.truncf %81 : vector<84x2xf32> to vector<84x2xbf16>
    %cst_21 = arith.constant dense<0.000000e+00> : vector<10x2xf32>
    %85 = tpu.matmul %82, %84, %cst_21 {dimension_numbers = #tpu.dot_dimension_numbers<[1], [0], [0], [1], [0, 0, 1, 1], [], []>} : vector<10x84xbf16>, vector<84x2xbf16>, vector<10x2xf32> -> vector<10x2xf32>
    %86 = vector.broadcast %83 : vector<10x1xf32> to vector<10x2xf32>
    %87 = arith.addf %85, %86 : vector<10x2xf32>
    %c0_22 = arith.constant 0 : index
    %c0_23 = arith.constant 0 : index
    %88 = vector.load %arg3[%c0_22, %c0_23] : memref<10x2xf32, #tpu.memory_space<vmem>>, vector<10x2xf32>
    tpu.vector_store %arg3[%c0_22, %c0_23], %87 {strides = array<i32>} : memref<10x2xf32, #tpu.memory_space<vmem>>, vector<10x2xf32>,
    return
  }
}

</mosaic_0001>

<bundles_post_ra>
// kernel: studentnet_forward.1
= control target key start
LH: loop header
LB: loop body
LE: loop exit
PB: predicated region body
PF: predicated region fallthrough
CT: control target
= control target key end

     0   :  { %v1682_v1 = vmov 0   ;;  %vm260_vm0 = vcmask 1041408   ;;  %vm256_vm1 = vcmask 818176   ;;  %s1684_s13 = smov 60   ;;  %s1685_s14 = smov 26   ;;  %vm414_vm2 = vcmask 769024   ;;  %s2124_s0 = inlined_call_operand.vmem [shape: bf16[100,648], index: 0, kind: input, shape index: {}]   ;;  %s2125_s2 = inlined_call_operand.vmem [shape: f32[248,1], index: 2, kind: input, shape index: {}]   ;;  %s2126_s1 = inlined_call_operand.vmem [shape: bf16[248,256], index: 1, kind: input, shape index: {}]   ;;  %s2127_s3 = inlined_call_operand.vmem [shape: f32[10,2], index: 3, kind: output, shape index: {}]  }
   0x1   :  { %v1521_v0 = vld [vmem:[%s2124_s0 + $0x4] ss:$24 sps:$4 sm:$0xff]   ;;  %311 = vmatprep.mubr.bf16.mxu0 %v1682_v1  ;;  %352 = vmatprep.mubr.bf16.mxu1 %v1682_v1  ;;  %v1525_v3 = vld [vmem:[%s2124_s0] ss:$24 sps:$4 sm:$0xff]   ;;  %v1527_v5 = vld [vmem:[%s2124_s0 + $0x34] ss:$24 sps:$4 sm:$0xff]  }
   0x2   :  { %v1523_v2 = vld [vmem:[%s2124_s0 + $0xc] ss:$24 sps:$4 sm:$0xff]   ;;  %1519 = vset.pattern.permute.xlu0 %v1682_v1  ;;  %1520 = vset.pattern.permute.xlu1 %v1682_v1  ;;  %v1526_v4 = vld [vmem:[%s2124_s0 + $0x8] ss:$24 sps:$4 sm:$0xff]   ;;  %v1529_v6 = vld [vmem:[%s2124_s0 + $0x3c] ss:$24 sps:$4 sm:$0xff]  }
   0x3   :  { %279 = vmatprep.subr.bf16.mxu0 %v1521_v0  ;;  %320 = vmatprep.subr.bf16.mxu1 %v1523_v2  ;;  %v1531_v7 = vld [vmem:[%s2124_s0 + $0x30] ss:$24 sps:$4 sm:$0xff]   ;;  %v1533_v9 = vld [vmem:[%s2124_s0 + $0x64] ss:$24 sps:$4 sm:$0xff]   ;;  %v1537_v11 = vld [vmem:[%s2124_s0 + $0x60] ss:$24 sps:$4 sm:$0xff]  }
   0x4   :  { %280 = vmatpush1.bf16.msra.mxu0 %v1525_v3  ;;  %321 = vmatpush1.bf16.msra.mxu1 %v1526_v4  ;;  %v1532_v8 = vld [vmem:[%s2124_s0 + $0x38] ss:$24 sps:$4 sm:$0xff]   ;;  %v1535_v10 = vld [vmem:[%s2124_s0 + $0x6c] ss:$24 sps:$4 sm:$0xff]   ;;  %v1538_v12 = vld [vmem:[%s2124_s0 + $0x68] ss:$24 sps:$4 sm:$0xff]  }
   0x5   :  { %281 = vmatprep.subr.bf16.mxu0 %v1527_v5  ;;  %322 = vmatprep.subr.bf16.mxu1 %v1529_v6  ;;  %v1539_v13 = vld [vmem:[%s2124_s0 + $0x94] ss:$24 sps:$4 sm:$0xff]   ;;  %v1543_v15 = vld [vmem:[%s2124_s0 + $0x90] ss:$24 sps:$4 sm:$0xff]   ;;  %v1545_v17 = vld [vmem:[%s2124_s0 + $0xc4] ss:$24 sps:$4 sm:$0xff]  }
   0x6   :  { %v1541_v14 = vld [vmem:[%s2124_s0 + $0x9c] ss:$24 sps:$4 sm:$0xff]   ;;  %v1544_v16 = vld [vmem:[%s2124_s0 + $0x98] ss:$24 sps:$4 sm:$0xff]   ;;  %v1547_v18 = vld [vmem:[%s2124_s0 + $0xcc] ss:$24 sps:$4 sm:$0xff]  }
   0x7   :  { %v1549_v19 = vld [vmem:[%s2124_s0 + $0xc0] ss:$24 sps:$4 sm:$0xff]   ;;  %v1551_v21 = vld [vmem:[%s2124_s0 + $0xf4] ss:$24 sps:$4 sm:$0xff]   ;;  %v1555_v25 = vld [vmem:[%s2124_s0 + $0xf0] ss:$24 sps:$4 sm:$0xff]  }
   0x8   :  { %282 = vmatpush1.bf16.msra.mxu0 %v1531_v7  ;;  %323 = vmatpush1.bf16.msra.mxu1 %v1532_v8  ;;  %v1550_v20 = vld [vmem:[%s2124_s0 + $0xc8] ss:$24 sps:$4 sm:$0xff]   ;;  %v1553_v22 = vld [vmem:[%s2124_s0 + $0xfc] ss:$24 sps:$4 sm:$0xff]   ;;  %v1556_v26 = vld [vmem:[%s2124_s0 + $0xf8] ss:$24 sps:$4 sm:$0xff]  }
   0x9   :  { %283 = vmatprep.subr.bf16.mxu0 %v1533_v9  ;;  %324 = vmatprep.subr.bf16.mxu1 %v1535_v10  ;;  %v53_v23 = vld [vmem:[%s2124_s0 + $0x120] sm:$0x33]  ;;  %v54_v24 = vld [vmem:[%s2124_s0 + $0x128] sm:$0x33]  ;;  %v55_v46 = vld [vmem:[%s2124_s0 + $0x130] sm:$0x33] }
   0xa   :  { %v1320_v27 = vcombine.high %v53_v23, %v53_v23  ;;  %v1322_v28 = vcombine.high %v54_v24, %v54_v24  ;;  %v1319_v29 = vcombine.low %v53_v23, %v53_v23  ;;  %v1321_v30 = vcombine.low %v54_v24, %v54_v24  ;;  %v1563_v33 = vld [vmem:[%s2124_s0 + $0x14] ss:$24 sps:$4 sm:$0xff]   ;;  %v16_v34 = vld [vmem:[%s2125_s2] sm:$0xff]  ;;  %v1561_v36 = vld [vmem:[%s2124_s0 + $0x10] ss:$24 sps:$4 sm:$0xff]   ;;  %s1686_s15 = smov 112  }
   0xb   :  { %v15_v35 = vld [vmem:[%s2126_s1] sm:$0xf]  ;;  %58 = vperm.xlu0 %1519, %v16_v34   ;;  %v1566_v37 = vld [vmem:[%s2124_s0 + $0x44] ss:$24 sps:$4 sm:$0xff]   ;;  %v1569_v39 = vld [vmem:[%s2124_s0 + $0x74] ss:$24 sps:$4 sm:$0xff]   ;;  %v1324_v48 = vcombine.high %v55_v46, %v55_v46  ;;  %v1323_v49 = vcombine.low %v55_v46, %v55_v46 }
   0xc   :  { %284 = vmatpush1.bf16.msra.mxu0 %v1537_v11  ;;  %325 = vmatpush1.bf16.msra.mxu1 %v1538_v12  ;;  %v262_v31 = vsel %vm260_vm0, %v1319_v29, 0  ;;  %v268_v32 = vsel %vm260_vm0, %v1321_v30, 0  ;;  %v1564_v38 = vld [vmem:[%s2124_s0 + $0x40] ss:$24 sps:$4 sm:$0xff]   ;;  %v1567_v40 = vld [vmem:[%s2124_s0 + $0x70] ss:$24 sps:$4 sm:$0xff]  }
   0xd   :  { %285 = vmatprep.subr.bf16.mxu0 %v1539_v13  ;;  %326 = vmatprep.subr.bf16.mxu1 %v1541_v14  ;;  %v1572_v41 = vld [vmem:[%s2124_s0 + $0xa4] ss:$24 sps:$4 sm:$0xff]   ;;  %v1570_v42 = vld [vmem:[%s2124_s0 + $0xa0] ss:$24 sps:$4 sm:$0xff]   ;;  %v1575_v43 = vld [vmem:[%s2124_s0 + $0xd4] ss:$24 sps:$4 sm:$0xff]  }
   0xe   :  { %v1573_v44 = vld [vmem:[%s2124_s0 + $0xd0] ss:$24 sps:$4 sm:$0xff]   ;;  %v1578_v45 = vld [vmem:[%s2124_s0 + $0x104] ss:$24 sps:$4 sm:$0xff]   ;;  %v1576_v47 = vld [vmem:[%s2124_s0 + $0x100] ss:$24 sps:$4 sm:$0xff]  }
   0xf   :  { %v274_v50 = vsel %vm260_vm0, %v1323_v49, 0  ;;  %s1683_s0 = smov 94   ;;  %vm425_vm3 = vcmask 490496   ;;  %vm439_vm4 = vcmask 211968   ;;  %s1687_s16 = smov 124   ;;  %vm482_vm5 = vcmask 1043456  }
  0x10   :  { %286 = vmatpush1.bf16.msra.mxu0 %v1543_v15  ;;  %327 = vmatpush1.bf16.msra.mxu1 %v1544_v16  ;;  %s1688_s17 = smov 108   ;;  %s1689_s18 = smov 126   ;;  %vm520_vm6 = vcmask 916480   ;;  %vm525_vm7 = vcmask 900096   ;;  %v1581_v46 = vld [vmem:[%s2126_s1 + $0xc] ss:$8 sps:$4 sm:$0xff]  }
  0x11   :  { %287 = vmatprep.subr.bf16.mxu0 %v1545_v17  ;;  %328 = vmatprep.subr.bf16.mxu1 %v1547_v18  ;;  %s1690_s19 = smov 122   ;;  %s1691_s20 = smov 110   ;;  %vm586_vm8 = vcmask 588800   ;;  %vm529_vm9 = vcmask 883712   ;;  %vm533_vm10 = vcmask 867328   ;;  %vm537_vm11 = vcmask 850944  }
  0x12   :  { %s1692_s21 = smov 106   ;;  %s1693_s22 = smov 104   ;;  %vm1089_vm12 = vcmask 982016   ;;  %vm1706_vm13 = vmmov 0   ;;  %vm1227_vm14 = vcmask 687104   ;;  %vm1275_vm15 = vcmask 15360  }
  0x13   :  { %s1694_s23 = smov 120   ;;  %s1695_s24 = smov 92  }
  0x14   :  { %288 = vmatpush1.bf16.msra.mxu0 %v1549_v19  ;;  %329 = vmatpush1.bf16.msra.mxu1 %v1550_v20  ;;  %s1696_s25 = smov 102   ;;  %s1697_s26 = smov 88  }
  0x15   :  { %289 = vmatprep.subr.bf16.mxu0 %v1551_v21  ;;  %330 = vmatprep.subr.bf16.mxu1 %v1553_v22  ;;  %s1698_s27 = smov 90   ;;  %s1699_s28 = smov 84  }
  0x16   :  { %s1700_s29 = smov 86   ;;  %s1701_s30 = smov 74  }
  0x17   :  { %s1702_s4 = smov 72  }
  0x18   :  { %290 = vmatpush1.bf16.msra.mxu0 %v1555_v25  ;;  %331 = vmatpush1.bf16.msra.mxu1 %v1556_v26 }
  0x19   :  { %1325 = vmatprep.subr.msk.bf16.mxu0 %vm260_vm0, %v1320_v27  ;;  %1327 = vmatprep.subr.msk.bf16.mxu1 %vm260_vm0, %v1322_v28 }
  0x1c   :  { %292 = vmatpush1.bf16.msra.mxu0 %v262_v31  ;;  %333 = vmatpush1.bf16.msra.mxu1 %v268_v32 }
  0x1d   :  { %361 = vmatprep.subr.bf16.mxu0 %v1563_v33  ;;  %593 = vmatprep.subr.bf16.mxu1 %v1682_v1 }
  0x1f   :  { %1326 = vmatmul.mubr.msk.bf16.vlgmr.msra.gmra.mrb[0].mxu0 %vm256_vm1, %v15_v35  ;;  %1328 = vmatmul.mubr.msk.bf16.vlgmr.msra.gmra.mrb[0].mxu1 %vm256_vm1, %v15_v35 }
  0x20   :  { %362 = vmatpush1.bf16.msra.mxu0 %v1561_v36  ;;  %393 = vmatprep.mubr.bf16.mxu0 %v1682_v1 }
  0x21   :  { %363 = vmatprep.subr.bf16.mxu0 %v1566_v37  ;;  %1333 = vmatprep.mubr.msk.bf16.mxu1 %vm586_vm8, %v1581_v46  ;;  %v987_v46 = vld [vmem:[%s2125_s2 + $0x90] sm:$0xff] }
  0x24   :  { %364 = vmatpush1.bf16.msra.mxu0 %v1564_v38 }
  0x25   :  { %365 = vmatprep.subr.bf16.mxu0 %v1569_v39 }
  0x28   :  { %366 = vmatpush1.bf16.msra.mxu0 %v1567_v40 }
  0x29   :  { %367 = vmatprep.subr.bf16.mxu0 %v1572_v41 }
  0x2c   :  { %368 = vmatpush1.bf16.msra.mxu0 %v1570_v42 }
  0x2d   :  { %369 = vmatprep.subr.bf16.mxu0 %v1575_v43 }
  0x30   :  { %370 = vmatpush1.bf16.msra.mxu0 %v1573_v44 }
  0x31   :  { %371 = vmatprep.subr.bf16.mxu0 %v1578_v45 }
  0x34   :  { %372 = vmatpush1.bf16.msra.mxu0 %v1576_v47 }
  0x35   :  { %1329 = vmatprep.subr.msk.bf16.mxu0 %vm260_vm0, %v1324_v48 }
  0x38   :  { %374 = vmatpush1.bf16.msra.mxu0 %v274_v50 }
  0x3b   :  { %1330 = vmatmul.mubr.msk.bf16.vlgmr.msra.gmra.mrb[4].mxu0 %vm256_vm1, %v15_v35  ;;  %vm1277_vm1 = vcmask 9216  }
  0x8a   :  { %v59_v51 = vpop.permute.xlu0 %58 }
  0xf2   :  { %v313_v52 = vpop.f32.mrb[0].mxu0  ;;  %v354_v53 = vpop.f32.mrb[0].mxu1 }
  0xf3   :  { %v355_v54 = vadd.f32 %v354_v53, %v59_v51  ;;  %v315_v55 = vpop.f32.mrb[1].mxu0  ;;  %v356_v56 = vpop.f32.mrb[1].mxu1  ;;  %v314_v11 = vadd.f32 %v313_v52, %v59_v51 }
  0xf4   :  { %v316_v57 = vadd.f32 %v315_v55, %v59_v51  ;;  %v317_v58 = vpop.f32.mrb[2].mxu0  ;;  %v358_v59 = vpop.f32.mrb[2].mxu1  ;;  %v357_v61 = vadd.f32 %v356_v56, %v59_v51 }
  0xf5   :  { %v318_v60 = vpop.f32.mrb[3].mxu0  ;;  %v359_v62 = vpop.f32.mrb[3].mxu1  ;;  %1614 = vtanh.f32 %v355_v54  ;;  %v565_v59 = vld [vmem:[%s2125_s2 + $0x8] sm:$0xff] }
  0xf6   :  { %1616 = vtanh.f32 %v316_v57  ;;  %v566_v62 = vld [vmem:[%s2125_s2 + $0x10] sm:$0xff] }
  0xf7   :  { %1618 = vtanh.f32 %v357_v61 }
  0xff   :  { %v1615_v63 = vpop.eup %1614 }
 0x100   :  { %v1617_v0 = vpop.eup %1616  ;;  %412 = vrot.lane.b32.xlu1 %v1615_v63, %s1683_s0 }
 0x101   :  { %410 = vrot.lane.b32.xlu0 %v1617_v0, %s1683_s0  ;;  %v1619_v2 = vpop.eup %1618 }
 0x104   :  { %421 = vrot.lane.b32.xlu1 %v1615_v63, %s1684_s13 }
 0x105   :  { %423 = vrot.lane.b32.xlu0 %v1619_v2, %s1684_s13 }
 0x108   :  { %433 = vrot.lane.b32.xlu1 %v1619_v2, %s1685_s14 }
 0x10e   :  { %v395_v3 = vpop.f32.mrb[4].mxu0 }
 0x10f   :  { %v396_v4 = vadd.f32 %v395_v3, %v59_v51  ;;  %v397_v5 = vpop.f32.mrb[5].mxu0 }
 0x110   :  { %v398_v6 = vadd.f32 %v397_v5, %v59_v51  ;;  %v399_v7 = vpop.f32.mrb[6].mxu0 }
 0x111   :  { %1620 = vtanh.f32 %v396_v4  ;;  %v400_v8 = vpop.f32.mrb[7].mxu0 }
 0x112   :  { %1622 = vtanh.f32 %v398_v6 }
 0x113   :  { %1624 = vtanh.f32 %v314_v11 }
 0x11b   :  { %v1621_v9 = vpop.eup %1620 }
 0x11c   :  { %v1623_v10 = vpop.eup %1622  ;;  %435 = vrot.lane.b32.xlu0 %v1621_v9, %s1685_s14 }
 0x11d   :  { %437 = vrot.lane.b32.xlu1 %v1623_v10, %s1685_s14  ;;  %v1625_v17 = vpop.eup %1624  ;;  %s1703_s14 = smov 70  }
 0x172   :  { %v413_v12 = vpop.permute.xlu1 %412 }
 0x173   :  { %v411_v13 = vpop.permute.xlu0 %410  ;;  %v419_v25 = vadd.f32 %v1617_v0, %v413_v12 }
 0x174   :  { %v415_v16 = vsel %vm414_vm2, %v411_v13, %v413_v12 }
 0x175   :  { %v418_v20 = vadd.f32 %v1625_v17, %v415_v16 }
 0x176   :  { %v422_v14 = vpop.permute.xlu1 %421 }
 0x177   :  { %v424_v15 = vpop.permute.xlu0 %423 }
 0x178   :  { %v426_v18 = vsel %vm425_vm3, %v422_v14, %v424_v15  ;;  %v430_v28 = vadd.f32 %v424_v15, %v419_v25 }
 0x179   :  { %v429_v21 = vadd.f32 %v426_v18, %v418_v20  ;;  %v1583_v18 = vld [vmem:[%s2126_s1 + $0x8] ss:$8 sps:$4 sm:$0xff]  }
 0x17a   :  { %v434_v19 = vpop.permute.xlu1 %433 }
 0x18e   :  { %v436_v22 = vpop.permute.xlu0 %435 }
 0x18f   :  { %v440_v23 = vsel %vm439_vm4, %v434_v19, %v436_v22  ;;  %v438_v24 = vpop.permute.xlu1 %437 }
 0x190   :  { %v444_v26 = vadd.f32 %v440_v23, %v429_v21  ;;  %v441_v27 = vsel %vm439_vm4, %v436_v22, %v438_v24 }
 0x191   :  { %v445_v31 = vadd.f32 %v441_v27, %v430_v28 }
 0x192   :  { %v446_v29 = vmul.f32 0.25, %v444_v26 }
 0x193   :  { %v447_v32 = vmul.f32 0.25, %v445_v31  ;;  %v700_v31 = vld [vmem:[%s2125_s2 + $0x28] sm:$0xff] }
 0x194   :  { %v448_v30 = vpack.c.bf16 %v446_v29, %v446_v29  ;;  %v1586_v29 = vld [vmem:[%s2126_s1 + $0x1c] ss:$8 sps:$4 sm:$0xff]  }
 0x195   :  { %v449_v34 = vpack.c.bf16 %v447_v32, %v447_v32  ;;  %897 = vmatprep.mubr.bf16.mxu0 %v1586_v29  ;;  %v699_v32 = vld [vmem:[%s2125_s2 + $0x20] sm:$0xff] }
 0x196   :  { %516 = vrot.lane.b32.xlu0 %v448_v30, %s1686_s15  ;;  %454 = vrot.lane.b32.xlu1 %v448_v30, %s1687_s16  ;;  %v451_v33 = vrot.slane %v448_v30, 4 }
 0x197   :  { %v522_v35 = vrot.slane %v449_v34, 4 }
 0x19a   :  { %462 = vrot.lane.b32.xlu1 %v448_v30, %s1688_s17  ;;  %452 = vrot.lane.b32.xlu0 %v451_v33, %s1689_s18 }
 0x19e   :  { %518 = vrot.lane.b32.xlu1 %v449_v34, %s1686_s15  ;;  %456 = vrot.lane.b32.xlu0 %v451_v33, %s1690_s19  ;;  %s1704_s15 = smov 68  }
 0x1a2   :  { %460 = vrot.lane.b32.xlu1 %v451_v33, %s1691_s20  ;;  %464 = vrot.lane.b32.xlu0 %v451_v33, %s1692_s21 }
 0x1a6   :  { %527 = vrot.lane.b32.xlu1 %v449_v34, %s1688_s17  ;;  %523 = vrot.lane.b32.xlu0 %v522_v35, %s1691_s20 }
 0x1aa   :  { %466 = vrot.lane.b32.xlu1 %v448_v30, %s1693_s22  ;;  %531 = vrot.lane.b32.xlu0 %v522_v35, %s1692_s21  ;;  %v704_v35 = vld [vmem:[%s2125_s2 + $0x48] sm:$0xff] }
 0x1ae   :  { %458 = vrot.lane.b32.xlu1 %v448_v30, %s1694_s23  ;;  %535 = vrot.lane.b32.xlu0 %v449_v34, %s1693_s22  ;;  %v701_v34 = vld [vmem:[%s2125_s2 + $0x30] sm:$0xff] }
 0x1b2   :  { %470 = vrot.lane.b32.xlu1 %v448_v30, %s1695_s24  ;;  %468 = vrot.lane.b32.xlu0 %v451_v33, %s1696_s25 }
 0x1b6   :  { %474 = vrot.lane.b32.xlu1 %v448_v30, %s1697_s26  ;;  %472 = vrot.lane.b32.xlu0 %v451_v33, %s1698_s27 }
 0x1ba   :  { %478 = vrot.lane.b32.xlu1 %v448_v30, %s1699_s28  ;;  %476 = vrot.lane.b32.xlu0 %v451_v33, %s1700_s29 }
 0x1be   :  { %480 = vrot.lane.b32.xlu0 %v451_v33, %s1701_s30  ;;  %v702_v33 = vld [vmem:[%s2125_s2 + $0x38] sm:$0xff] }
 0x208   :  { %v517_v36 = vpop.permute.xlu0 %516  ;;  %v455_v37 = vpop.permute.xlu1 %454 }
 0x20c   :  { %v463_v38 = vpop.permute.xlu1 %462  ;;  %v453_v39 = vpop.permute.xlu0 %452 }
 0x20d   :  { %v485_v40 = vsel %vm482_vm5, %v448_v30, %v453_v39  ;;  %v698_v30 = vld [vmem:[%s2125_s2 + $0x18] sm:$0xff]  ;;  %v708_v39 = vld [vmem:[%s2125_s2 + $0x68] sm:$0xff] }
 0x20e   :  { %549 = vrot.lane.b32.xlu1 %v485_v40, %s1702_s4  ;;  %594 = vmatpush1.bf16.msra.mxu1 %v485_v40  ;;  %v707_v40 = vld [vmem:[%s2125_s2 + $0x60] sm:$0xff] }
 0x20f   :  { %595 = vmatprep.subr.bf16.mxu1 %v1682_v1 }
 0x210   :  { %v519_v41 = vpop.permute.xlu1 %518  ;;  %v457_v42 = vpop.permute.xlu0 %456 }
 0x211   :  { %v489_v43 = vsel %vm482_vm5, %v455_v37, %v457_v42  ;;  %v521_v49 = vsel %vm520_vm6, %v517_v36, %v519_v41  ;;  %v703_v36 = vld [vmem:[%s2125_s2 + $0x40] sm:$0xff]  ;;  %v706_v37 = vld [vmem:[%s2125_s2 + $0x58] sm:$0xff]  ;;  %v709_v42 = vld [vmem:[%s2125_s2 + $0x70] sm:$0xff] }
 0x212   :  { %551 = vrot.lane.b32.xlu0 %v489_v43, %s1702_s4  ;;  %596 = vmatpush1.bf16.msra.mxu1 %v489_v43  ;;  %v710_v41 = vld [vmem:[%s2125_s2 + $0x78] sm:$0xff]  ;;  %v712_v43 = vld [vmem:[%s2125_s2 + $0x88] sm:$0xff] }
 0x213   :  { %597 = vmatprep.subr.bf16.mxu1 %v1682_v1 }
 0x214   :  { %v461_v44 = vpop.permute.xlu1 %460  ;;  %v465_v45 = vpop.permute.xlu0 %464 }
 0x215   :  { %v497_v0 = vsel %vm482_vm5, %v463_v38, %v465_v45 }
 0x218   :  { %v528_v47 = vpop.permute.xlu1 %527  ;;  %v524_v48 = vpop.permute.xlu0 %523 }
 0x219   :  { %v526_v50 = vsel %vm525_vm7, %v461_v44, %v524_v48  ;;  %v530_v54 = vsel %vm529_vm9, %v463_v38, %v528_v47  ;;  %v705_v38 = vld [vmem:[%s2125_s2 + $0x50] sm:$0xff]  ;;  %v990_v47 = vld [vmem:[%s2125_s2 + $0xa8] sm:$0xff]  ;;  %v989_v48 = vld [vmem:[%s2125_s2 + $0xa0] sm:$0xff] }
 0x21a   :  { %v541_v51 = vsel %vm482_vm5, %v521_v49, %v526_v50  ;;  %v992_v49 = vld [vmem:[%s2125_s2 + $0xb8] sm:$0xff]  ;;  %v991_v50 = vld [vmem:[%s2125_s2 + $0xb0] sm:$0xff] }
 0x21b   :  { %553 = vrot.lane.b32.xlu1 %v541_v51, %s1702_s4  ;;  %v994_v51 = vld [vmem:[%s2125_s2 + $0xc8] sm:$0xff] }
 0x21c   :  { %v467_v52 = vpop.permute.xlu1 %466  ;;  %v532_v53 = vpop.permute.xlu0 %531 }
 0x21d   :  { %v534_v55 = vsel %vm533_vm10, %v465_v45, %v532_v53  ;;  %v988_v45 = vld [vmem:[%s2125_s2 + $0x98] sm:$0xff] }
 0x21e   :  { %v544_v56 = vsel %vm482_vm5, %v530_v54, %v534_v55  ;;  %v996_v53 = vld [vmem:[%s2125_s2 + $0xd8] sm:$0xff]  ;;  %v995_v54 = vld [vmem:[%s2125_s2 + $0xd0] sm:$0xff]  ;;  %v1204_v55 = vld [vmem:[%s2125_s2 + $0xe8] sm:$0xff] }
 0x21f   :  { %555 = vrot.lane.b32.xlu0 %v544_v56, %s1702_s4  ;;  %v997_v56 = vld [vmem:[%s2125_s2 + $0xe0] sm:$0xf] }
 0x220   :  { %v459_v57 = vpop.permute.xlu1 %458  ;;  %v536_v58 = vpop.permute.xlu0 %535 }
 0x221   :  { %v493_v60 = vsel %vm482_vm5, %v459_v57, %v461_v44  ;;  %v538_v61 = vsel %vm537_vm11, %v467_v52, %v536_v58  ;;  %v711_v44 = vld [vmem:[%s2125_s2 + $0x80] sm:$0xff]  ;;  %v1205_v57 = vld [vmem:[%s2125_s2 + $0xf0] sm:$0x3] }
 0x222   :  { %598 = vmatpush1.bf16.msra.mxu1 %v493_v60  ;;  %557 = vrot.lane.b32.xlu1 %v538_v61, %s1702_s4 }
 0x223   :  { %569 = vperm.xlu0 %1519, %v565_v59   ;;  %599 = vmatprep.subr.bf16.mxu1 %v1682_v1 }
 0x224   :  { %v469_v63 = vpop.permute.xlu0 %468  ;;  %v471_v2 = vpop.permute.xlu1 %470 }
 0x225   :  { %v501_v4 = vsel %vm482_vm5, %v467_v52, %v469_v63  ;;  %v993_v52 = vld [vmem:[%s2125_s2 + $0xc0] sm:$0xff] }
 0x226   :  { %600 = vmatpush1.bf16.msra.mxu1 %v497_v0  ;;  %574 = vperm.xlu1 %1520, %v566_v62  }
 0x227   :  { %601 = vmatprep.subr.bf16.mxu1 %v1682_v1 }
 0x228   :  { %v473_v3 = vpop.permute.xlu0 %472  ;;  %v475_v7 = vpop.permute.xlu1 %474 }
 0x229   :  { %v505_v6 = vsel %vm482_vm5, %v471_v2, %v473_v3 }
 0x22a   :  { %602 = vmatpush1.bf16.msra.mxu1 %v501_v4 }
 0x22b   :  { %603 = vmatprep.subr.bf16.mxu1 %v1682_v1 }
 0x22c   :  { %v477_v5 = vpop.permute.xlu0 %476  ;;  %v479_v10 = vpop.permute.xlu1 %478 }
 0x22d   :  { %v509_v8 = vsel %vm482_vm5, %v475_v7, %v477_v5 }
 0x22e   :  { %604 = vmatpush1.bf16.msra.mxu1 %v505_v6 }
 0x22f   :  { %605 = vmatprep.subr.bf16.mxu1 %v1682_v1 }
 0x230   :  { %v481_v9 = vpop.permute.xlu0 %480 }
 0x231   :  { %v513_v11 = vsel %vm482_vm5, %v479_v10, %v481_v9  ;;  %v1584_v10 = vld [vmem:[%s2126_s1 + $0x18] ss:$8 sps:$4 sm:$0xff]  }
 0x232   :  { %606 = vmatpush1.bf16.msra.mxu1 %v509_v8 }
 0x233   :  { %607 = vmatprep.subr.bf16.mxu1 %v1682_v1 }
 0x236   :  { %608 = vmatpush1.bf16.msra.mxu1 %v513_v11  ;;  %v1587_v11 = vld [vmem:[%s2126_s1 + $0x2c] ss:$8 sps:$4 sm:$0xff]  }
 0x237   :  { %609 = vmatprep.subr.bf16.mxu1 %v1682_v1 }
 0x280   :  { %v550_v12 = vpop.permute.xlu1 %549 }
 0x281   :  { %610 = vmatpush1.bf16.msra.mxu1 %v550_v12  ;;  %v1589_v12 = vld [vmem:[%s2126_s1 + $0x28] ss:$8 sps:$4 sm:$0xff]  }
 0x282   :  { %611 = vmatprep.subr.bf16.mxu1 %v1682_v1 }
 0x284   :  { %v552_v13 = vpop.permute.xlu0 %551 }
 0x285   :  { %612 = vmatpush1.bf16.msra.mxu1 %v552_v13  ;;  %v1590_v13 = vld [vmem:[%s2126_s1 + $0x3c] ss:$8 sps:$4 sm:$0xff]  }
 0x286   :  { %613 = vmatprep.subr.bf16.mxu1 %v1682_v1 }
 0x28d   :  { %v554_v14 = vpop.permute.xlu1 %553 }
 0x28e   :  { %614 = vmatpush1.bf16.msra.mxu1 %v554_v14  ;;  %v1592_v14 = vld [vmem:[%s2126_s1 + $0x38] ss:$8 sps:$4 sm:$0xff]  }
 0x28f   :  { %615 = vmatprep.subr.bf16.mxu1 %v1682_v1 }
 0x291   :  { %v556_v15 = vpop.permute.xlu0 %555 }
 0x292   :  { %616 = vmatpush1.bf16.msra.mxu1 %v556_v15  ;;  %v1593_v15 = vld [vmem:[%s2126_s1 + $0x4c] ss:$8 sps:$4 sm:$0xff]  }
 0x293   :  { %617 = vmatprep.subr.bf16.mxu1 %v1682_v1 }
 0x294   :  { %v558_v16 = vpop.permute.xlu1 %557 }
 0x295   :  { %v591_v17 = vsel %vm482_vm5, %v558_v16, 0  ;;  %v1595_v16 = vld [vmem:[%s2126_s1 + $0x48] ss:$8 sps:$4 sm:$0xff]  }
 0x296   :  { %618 = vmatpush1.bf16.msra.mxu1 %v591_v17  ;;  %v1596_v17 = vld [vmem:[%s2126_s1 + $0x5c] ss:$8 sps:$4 sm:$0xff]  }
 0x299   :  { %626 = vmatmul.mubr.bf16.vlgmr.msra.gmra.mrb[4].mxu1 %v1583_v18  ;;  %v1598_v18 = vld [vmem:[%s2126_s1 + $0x58] ss:$8 sps:$4 sm:$0xff]  }
 0x2a2   :  { %v570_v19 = vpop.permute.xlu0 %569 }
 0x2a5   :  { %v575_v21 = vpop.permute.xlu1 %574 }
 0x36c   :  { %v627_v20 = vpop.f32.mrb[4].mxu1 }
 0x36d   :  { %v628_v22 = vadd.f32 %v627_v20, %v570_v19  ;;  %v629_v23 = vpop.f32.mrb[5].mxu1  ;;  %v1599_v19 = vld [vmem:[%s2126_s1 + $0x6c] ss:$8 sps:$4 sm:$0xff]   ;;  %v1601_v20 = vld [vmem:[%s2126_s1 + $0x68] ss:$8 sps:$4 sm:$0xff]  }
 0x36e   :  { %v630_v24 = vpop.f32.mrb[6].mxu1  ;;  %v1604_v23 = vld [vmem:[%s2126_s1 + $0x78] ss:$8 sps:$4 sm:$0xff]  }
 0x36f   :  { %v631_v25 = vadd.f32 %v630_v24, %v575_v21  ;;  %v632_v26 = vpop.f32.mrb[7].mxu1  ;;  %1626 = vtanh.f32 %v628_v22  ;;  %v1602_v21 = vld [vmem:[%s2126_s1 + $0x7c] ss:$8 sps:$4 sm:$0xff]   ;;  %v697_v22 = vld [vmem:[%s2126_s1 + $0x88] sm:$0xff] }
 0x370   :  { %v1349_v24 = vcombine.high %v697_v22, %v697_v22  ;;  %v1607_v26 = vld [vmem:[%s2126_s1 + $0x90] ss:$8 sps:$4 sm:$0xff]  }
 0x371   :  { %1628 = vtanh.f32 %v631_v25  ;;  %v1348_v25 = vcombine.low %v697_v22, %v697_v22  ;;  %1465 = vmatprep.mubr.msk.bf16.mxu1 %vm1089_vm12, %v1607_v26 }
 0x379   :  { %v1627_v1 = vpop.eup %1626 }
 0x37b   :  { %v1629_v27 = vpop.eup %1628 }
 0x37c   :  { %v1921_v28 = vpack.c.bf16 %v1629_v27, %v1627_v1 }
 0x37e   :  { %662 = vrot.lane.b32.xlu1 %v1921_v28, %s1698_s27  ;;  %659 = vrot.lane.b32.xlu0 %v1921_v28, %s1695_s24 }
 0x382   :  { %665 = vrot.lane.b32.xlu1 %v1921_v28, %s1697_s26  ;;  %638 = vrot.lane.b32.xlu0 %v1921_v28, %s1689_s18 }
 0x386   :  { %668 = vrot.lane.b32.xlu1 %v1921_v28, %s1700_s29  ;;  %641 = vrot.lane.b32.xlu0 %v1921_v28, %s1687_s16 }
 0x38a   :  { %671 = vrot.lane.b32.xlu1 %v1921_v28, %s1701_s30  ;;  %644 = vrot.lane.b32.xlu0 %v1921_v28, %s1690_s19 }
 0x38e   :  { %674 = vrot.lane.b32.xlu1 %v1921_v28, %s1702_s4  ;;  %647 = vrot.lane.b32.xlu0 %v1921_v28, %s1691_s20 }
 0x392   :  { %677 = vrot.lane.b32.xlu1 %v1921_v28, %s1703_s14  ;;  %650 = vrot.lane.b32.xlu0 %v1921_v28, %s1688_s17 }
 0x396   :  { %680 = vrot.lane.b32.xlu1 %v1921_v28, %s1704_s15  ;;  %653 = vrot.lane.b32.xlu0 %v1921_v28, %s1692_s21 }
 0x39a   :  { %715 = vperm.xlu1 %1520, %v698_v30   ;;  %656 = vrot.lane.b32.xlu0 %v1921_v28, %s1693_s22 }
 0x39e   :  { %725 = vperm.xlu1 %1520, %v700_v31   ;;  %720 = vperm.xlu0 %1519, %v699_v32  }
 0x3a2   :  { %735 = vperm.xlu1 %1520, %v702_v33   ;;  %730 = vperm.xlu0 %1519, %v701_v34  }
 0x3a6   :  { %745 = vperm.xlu1 %1520, %v704_v35   ;;  %740 = vperm.xlu0 %1519, %v703_v36  }
 0x3aa   :  { %755 = vperm.xlu1 %1520, %v706_v37   ;;  %750 = vperm.xlu0 %1519, %v705_v38  }
 0x3ae   :  { %765 = vperm.xlu1 %1520, %v708_v39   ;;  %760 = vperm.xlu0 %1519, %v707_v40  }
 0x3b2   :  { %775 = vperm.xlu1 %1520, %v710_v41   ;;  %770 = vperm.xlu0 %1519, %v709_v42  }
 0x3b6   :  { %785 = vperm.xlu1 %1520, %v712_v43   ;;  %780 = vperm.xlu0 %1519, %v711_v44  }
 0x3ba   :  { %1013 = vperm.xlu1 %1520, %v988_v45   ;;  %1008 = vperm.xlu0 %1519, %v987_v46  }
 0x3be   :  { %1023 = vperm.xlu1 %1520, %v990_v47   ;;  %1018 = vperm.xlu0 %1519, %v989_v48  }
 0x3c2   :  { %1033 = vperm.xlu1 %1520, %v992_v49   ;;  %1028 = vperm.xlu0 %1519, %v991_v50  }
 0x3c6   :  { %1043 = vperm.xlu1 %1520, %v994_v51   ;;  %1038 = vperm.xlu0 %1519, %v993_v52  }
 0x3ca   :  { %1053 = vperm.xlu1 %1520, %v996_v53   ;;  %1048 = vperm.xlu0 %1519, %v995_v54  }
 0x3ce   :  { %1214 = vperm.xlu1 %1520, %v1204_v55   ;;  %1058 = vperm.xlu0 %1519, %v997_v56  }
 0x3d2   :  { %1219 = vperm.xlu0 %1519, %v1205_v57  }
 0x3f0   :  { %v663_v58 = vpop.permute.xlu1 %662  ;;  %v660_v59 = vpop.permute.xlu0 %659 }
 0x3f1   :  { %1364 = vmatprep.subr.bf16.mxu0 %v660_v59 }
 0x3f2   :  { %1365 = vmatpush3.bf16.msra.mxu0 %v1921_v28 }
 0x3f3   :  { %1366 = vmatprep.subr.bf16.mxu0 %v663_v58 }
 0x3f4   :  { %v666_v60 = vpop.permute.xlu1 %665  ;;  %v639_v61 = vpop.permute.xlu0 %638 }
 0x3f6   :  { %1367 = vmatpush3.bf16.msra.mxu0 %v639_v61 }
 0x3f7   :  { %1368 = vmatprep.subr.bf16.mxu0 %v666_v60 }
 0x3f8   :  { %v669_v62 = vpop.permute.xlu1 %668  ;;  %v642_v63 = vpop.permute.xlu0 %641 }
 0x3fa   :  { %1369 = vmatpush3.bf16.msra.mxu0 %v642_v63 }
 0x3fb   :  { %1370 = vmatprep.subr.bf16.mxu0 %v669_v62 }
 0x3fc   :  { %v672_v0 = vpop.permute.xlu1 %671  ;;  %v645_v2 = vpop.permute.xlu0 %644 }
 0x3fe   :  { %1371 = vmatpush3.bf16.msra.mxu0 %v645_v2 }
 0x3ff   :  { %1372 = vmatprep.subr.bf16.mxu0 %v672_v0 }
 0x400   :  { %v675_v3 = vpop.permute.xlu1 %674  ;;  %v648_v4 = vpop.permute.xlu0 %647 }
 0x402   :  { %1373 = vmatpush3.bf16.msra.mxu0 %v648_v4 }
 0x403   :  { %1374 = vmatprep.subr.bf16.mxu0 %v675_v3 }
 0x404   :  { %v678_v5 = vpop.permute.xlu1 %677  ;;  %v651_v6 = vpop.permute.xlu0 %650 }
 0x406   :  { %1375 = vmatpush3.bf16.msra.mxu0 %v651_v6 }
 0x407   :  { %1376 = vmatprep.subr.bf16.mxu0 %v678_v5 }
 0x408   :  { %v654_v7 = vpop.permute.xlu0 %653  ;;  %v681_v8 = vpop.permute.xlu1 %680 }
 0x40a   :  { %1377 = vmatpush3.bf16.msra.mxu0 %v654_v7 }
 0x40b   :  { %1378 = vmatprep.subr.bf16.mxu0 %v681_v8 }
 0x40c   :  { %v657_v9 = vpop.permute.xlu0 %656 }
 0x40e   :  { %1379 = vmatpush3.bf16.msra.mxu0 %v657_v9 }
 0x411   :  { %898 = vmatmul.mubr.bf16.vlgmr.msra.gmra.mrb[8].mxu0 %v1584_v10 }
 0x412   :  { %905 = vmatprep.mubr.bf16.mxu0 %v1587_v11 }
 0x419   :  { %906 = vmatmul.mubr.bf16.gmra.mrb[12].mxu0 %v1589_v12  ;;  %v716_v30 = vpop.permute.xlu1 %715 }
 0x41a   :  { %913 = vmatprep.mubr.bf16.mxu0 %v1590_v13 }
 0x41d   :  { %v721_v34 = vpop.permute.xlu0 %720  ;;  %v726_v40 = vpop.permute.xlu1 %725 }
 0x421   :  { %914 = vmatmul.mubr.bf16.gmra.mrb[16].mxu0 %v1592_v14  ;;  %v731_v44 = vpop.permute.xlu0 %730  ;;  %v736_v52 = vpop.permute.xlu1 %735 }
 0x422   :  { %921 = vmatprep.mubr.bf16.mxu0 %v1593_v15 }
 0x425   :  { %v741_v57 = vpop.permute.xlu0 %740  ;;  %v746_v2 = vpop.permute.xlu1 %745 }
 0x429   :  { %922 = vmatmul.mubr.bf16.gmra.mrb[20].mxu0 %v1595_v16  ;;  %v751_v7 = vpop.permute.xlu0 %750  ;;  %v756_v15 = vpop.permute.xlu1 %755 }
 0x42a   :  { %929 = vmatprep.mubr.bf16.mxu0 %v1596_v17 }
 0x431   :  { %930 = vmatmul.mubr.bf16.gmra.mrb[24].mxu0 %v1598_v18 }
 0x432   :  { %937 = vmatprep.mubr.bf16.mxu0 %v1599_v19 }
 0x439   :  { %938 = vmatmul.mubr.bf16.gmra.mrb[28].mxu0 %v1601_v20  ;;  %v761_v20 = vpop.permute.xlu0 %760 }
 0x43a   :  { %945 = vmatprep.mubr.bf16.mxu0 %v1602_v21 }
 0x441   :  { %946 = vmatmul.mubr.bf16.gmra.mrb[32].mxu0 %v1604_v23 }
 0x442   :  { %953 = vmatprep.mubr.bf16.mxu0 %v1349_v24 }
 0x449   :  { %954 = vmatmul.mubr.bf16.gmra.mrb[36].mxu0 %v1348_v25 }
 0x4e4   :  { %v1380_v1 = vpop.f32.mrb[8].mxu0 }
 0x4e5   :  { %v1381_v27 = vpop.f32.mrb[9].mxu0 }
 0x4e6   :  { %v1382_v28 = vadd.f32 %v1381_v27, %v1380_v1  ;;  %v1383_v29 = vpop.f32.mrb[10].mxu0  ;;  %v766_v27 = vpop.permute.xlu1 %765 }
 0x4e7   :  { %v1384_v31 = vpop.f32.mrb[11].mxu0 }
 0x4e8   :  { %v900_v32 = vadd.f32 %v1382_v28, %v716_v30  ;;  %v1385_v33 = vadd.f32 %v1384_v31, %v1383_v29 }
 0x4ea   :  { %v903_v35 = vadd.f32 %v1385_v33, %v721_v34  ;;  %1630 = vtanh.f32 %v900_v32  ;;  %v771_v32 = vpop.permute.xlu0 %770 }
 0x4ec   :  { %1632 = vtanh.f32 %v903_v35  ;;  %v1386_v36 = vpop.f32.mrb[12].mxu0 }
 0x4ed   :  { %v1387_v37 = vpop.f32.mrb[13].mxu0 }
 0x4ee   :  { %v1388_v38 = vadd.f32 %v1387_v37, %v1386_v36  ;;  %v1389_v39 = vpop.f32.mrb[14].mxu0 }
 0x4ef   :  { %v1390_v41 = vpop.f32.mrb[15].mxu0 }
 0x4f0   :  { %v908_v42 = vadd.f32 %v1388_v38, %v726_v40  ;;  %v1391_v43 = vadd.f32 %v1390_v41, %v1389_v39  ;;  %v776_v40 = vpop.permute.xlu1 %775 }
 0x4f2   :  { %v911_v45 = vadd.f32 %v1391_v43, %v731_v44  ;;  %1634 = vtanh.f32 %v908_v42 }
 0x4f4   :  { %1636 = vtanh.f32 %v911_v45  ;;  %v1392_v46 = vpop.f32.mrb[16].mxu0  ;;  %v1631_v47 = vpop.eup %1630 }
 0x4f5   :  { %v1393_v48 = vpop.f32.mrb[17].mxu0  ;;  %v781_v45 = vpop.permute.xlu0 %780 }
 0x4f6   :  { %v1633_v49 = vpop.eup %1632  ;;  %v1394_v50 = vadd.f32 %v1393_v48, %v1392_v46  ;;  %v1395_v51 = vpop.f32.mrb[18].mxu0 }
 0x4f7   :  { %v1396_v53 = vpop.f32.mrb[19].mxu0  ;;  %v998_v54 = vpack.c.bf16 %v1633_v49, %v1631_v47 }
 0x4f8   :  { %v916_v55 = vadd.f32 %v1394_v50, %v736_v52  ;;  %v1397_v56 = vadd.f32 %v1396_v53, %v1395_v51  ;;  %v786_v53 = vpop.permute.xlu1 %785 }
 0x4f9   :  { %1449 = vmatprep.subr.bf16.mxu1 %v998_v54 }
 0x4fa   :  { %v919_v58 = vadd.f32 %v1397_v56, %v741_v57  ;;  %1450 = vmatpush3.bf16.msra.mxu1 %v998_v54  ;;  %1638 = vtanh.f32 %v916_v55 }
 0x4fc   :  { %1640 = vtanh.f32 %v919_v58  ;;  %v1398_v59 = vpop.f32.mrb[20].mxu0  ;;  %v1635_v60 = vpop.eup %1634 }
 0x4fd   :  { %v1399_v61 = vpop.f32.mrb[21].mxu0 }
 0x4fe   :  { %v1637_v62 = vpop.eup %1636  ;;  %v1400_v63 = vadd.f32 %v1399_v61, %v1398_v59  ;;  %v1401_v0 = vpop.f32.mrb[22].mxu0 }
 0x4ff   :  { %v1402_v3 = vpop.f32.mrb[23].mxu0  ;;  %v999_v4 = vpack.c.bf16 %v1637_v62, %v1635_v60 }
 0x500   :  { %v924_v5 = vadd.f32 %v1400_v63, %v746_v2  ;;  %v1403_v6 = vadd.f32 %v1402_v3, %v1401_v0  ;;  %v1608_v63 = vld [vmem:[%s2126_s1 + $0xa0] ss:$8 sps:$4 sm:$0xff]   ;;  %v1609_v0 = vld [vmem:[%s2126_s1 + $0xb0] ss:$8 sps:$4 sm:$0xff]  }
 0x501   :  { %1451 = vmatprep.subr.bf16.mxu1 %v999_v4  ;;  %v1610_v2 = vld [vmem:[%s2126_s1 + $0xc0] ss:$8 sps:$4 sm:$0xff]   ;;  %v1611_v3 = vld [vmem:[%s2126_s1 + $0xd0] ss:$8 sps:$4 sm:$0xff]  }
 0x502   :  { %v927_v8 = vadd.f32 %v1403_v6, %v751_v7  ;;  %1452 = vmatpush3.bf16.msra.mxu1 %v999_v4  ;;  %1642 = vtanh.f32 %v924_v5  ;;  %v1612_v4 = vld [vmem:[%s2126_s1 + $0xe0] ss:$0 sps:$4 sm:$0x33]   ;;  %v1705_v5 = vmov 0.0   ;;  %v1009_v6 = vpop.permute.xlu0 %1008  ;;  %v1014_v7 = vpop.permute.xlu1 %1013 }
 0x504   :  { %1644 = vtanh.f32 %v927_v8  ;;  %v1404_v9 = vpop.f32.mrb[24].mxu0  ;;  %v1639_v10 = vpop.eup %1638 }
 0x505   :  { %v1405_v11 = vpop.f32.mrb[25].mxu0 }
 0x506   :  { %v1641_v12 = vpop.eup %1640  ;;  %v1406_v13 = vadd.f32 %v1405_v11, %v1404_v9  ;;  %v1407_v14 = vpop.f32.mrb[26].mxu0 }
 0x507   :  { %v1408_v16 = vpop.f32.mrb[27].mxu0  ;;  %v1000_v17 = vpack.c.bf16 %v1641_v12, %v1639_v10  ;;  %v1019_v8 = vpop.permute.xlu0 %1018 }
 0x508   :  { %v932_v18 = vadd.f32 %v1406_v13, %v756_v15  ;;  %v1409_v19 = vadd.f32 %v1408_v16, %v1407_v14  ;;  %v1024_v9 = vpop.permute.xlu1 %1023 }
 0x509   :  { %1453 = vmatprep.subr.bf16.mxu1 %v1000_v17 }
 0x50a   :  { %v935_v21 = vadd.f32 %v1409_v19, %v761_v20  ;;  %1454 = vmatpush3.bf16.msra.mxu1 %v1000_v17  ;;  %1646 = vtanh.f32 %v932_v18 }
 0x50b   :  { %v1029_v10 = vpop.permute.xlu0 %1028 }
 0x50c   :  { %1648 = vtanh.f32 %v935_v21  ;;  %v1410_v22 = vpop.f32.mrb[28].mxu0  ;;  %v1643_v23 = vpop.eup %1642 }
 0x50d   :  { %v1411_v24 = vpop.f32.mrb[29].mxu0  ;;  %v1034_v16 = vpop.permute.xlu1 %1033 }
 0x50e   :  { %v1645_v25 = vpop.eup %1644  ;;  %v1412_v26 = vadd.f32 %v1411_v24, %v1410_v22  ;;  %v1413_v1 = vpop.f32.mrb[30].mxu0 }
 0x50f   :  { %v1414_v28 = vpop.f32.mrb[31].mxu0  ;;  %v1001_v29 = vpack.c.bf16 %v1645_v25, %v1643_v23  ;;  %v1039_v19 = vpop.permute.xlu0 %1038 }
 0x510   :  { %v940_v30 = vadd.f32 %v1412_v26, %v766_v27  ;;  %v1415_v31 = vadd.f32 %v1414_v28, %v1413_v1 }
 0x511   :  { %1455 = vmatprep.subr.bf16.mxu1 %v1001_v29  ;;  %v1044_v22 = vpop.permute.xlu1 %1043 }
 0x512   :  { %v943_v33 = vadd.f32 %v1415_v31, %v771_v32  ;;  %1456 = vmatpush3.bf16.msra.mxu1 %v1001_v29  ;;  %1650 = vtanh.f32 %v940_v30 }
 0x513   :  { %v1049_v25 = vpop.permute.xlu0 %1048 }
 0x514   :  { %1652 = vtanh.f32 %v943_v33  ;;  %v1416_v34 = vpop.f32.mrb[32].mxu0  ;;  %v1647_v35 = vpop.eup %1646 }
 0x515   :  { %v1417_v36 = vpop.f32.mrb[33].mxu0 }
 0x516   :  { %v1649_v37 = vpop.eup %1648  ;;  %v1418_v38 = vadd.f32 %v1417_v36, %v1416_v34  ;;  %v1419_v39 = vpop.f32.mrb[34].mxu0 }
 0x517   :  { %v1420_v41 = vpop.f32.mrb[35].mxu0  ;;  %v1002_v42 = vpack.c.bf16 %v1649_v37, %v1647_v35  ;;  %v1059_v34 = vpop.permute.xlu0 %1058 }
 0x518   :  { %v948_v43 = vadd.f32 %v1418_v38, %v776_v40  ;;  %v1421_v44 = vadd.f32 %v1420_v41, %v1419_v39 }
 0x519   :  { %1457 = vmatprep.subr.bf16.mxu1 %v1002_v42 }
 0x51a   :  { %v951_v46 = vadd.f32 %v1421_v44, %v781_v45  ;;  %1458 = vmatpush3.bf16.msra.mxu1 %v1002_v42  ;;  %1654 = vtanh.f32 %v948_v43  ;;  %v1054_v42 = vpop.permute.xlu1 %1053 }
 0x51c   :  { %1656 = vtanh.f32 %v951_v46  ;;  %v1422_v47 = vpop.f32.mrb[36].mxu0  ;;  %v1651_v48 = vpop.eup %1650 }
 0x51d   :  { %v1423_v49 = vpop.f32.mrb[37].mxu0 }
 0x51e   :  { %v1653_v50 = vpop.eup %1652  ;;  %v1424_v51 = vadd.f32 %v1423_v49, %v1422_v47  ;;  %v1425_v52 = vpop.f32.mrb[38].mxu0 }
 0x51f   :  { %v1426_v54 = vpop.f32.mrb[39].mxu0  ;;  %v1003_v55 = vpack.c.bf16 %v1653_v50, %v1651_v48 }
 0x520   :  { %v956_v56 = vadd.f32 %v1424_v51, %v786_v53 }
 0x521   :  { %1459 = vmatprep.subr.bf16.mxu1 %v1003_v55 }
 0x522   :  { %1658 = vtanh.f32 %v956_v56  ;;  %1460 = vmatpush3.bf16.msra.mxu1 %v1003_v55 }
 0x524   :  { %v1655_v57 = vpop.eup %1654 }
 0x526   :  { %v1657_v58 = vpop.eup %1656 }
 0x527   :  { %v1004_v59 = vpack.c.bf16 %v1657_v58, %v1655_v57  ;;  %v1613_v57 = vld [vmem:[%s2126_s1 + $0xe8] ss:$8 sps:$4 sm:$0x1f]   ;;  %v1215_v58 = vpop.permute.xlu1 %1214 }
 0x529   :  { %1461 = vmatprep.subr.bf16.mxu1 %v1004_v59 }
 0x52a   :  { %1462 = vmatpush3.bf16.msra.mxu1 %v1004_v59 }
 0x52c   :  { %v1659_v60 = vpop.eup %1658 }
 0x52d   :  { %v1005_v61 = vpack.c.bf16 %v1659_v60, %v1659_v60 }
 0x52f   :  { %1493 = vmatprep.subr.msk.bf16.mxu1 %vm482_vm5, %v1005_v61  ;;  %v1109_v62 = vsel %vm482_vm5, %v1005_v61, 0 }
 0x530   :  { %1464 = vmatpush3.bf16.msra.mxu1 %v1109_v62  ;;  %v1220_v62 = vpop.permute.xlu0 %1219 }
 0x531   :  { %1477 = vmatprep.subr.bf16.mxu1 %v1705_v5 }
 0x533   :  { %1466 = vmatmul.mubr.msk.bf16.vlgmr.msra.gmra.mrb[8].mxu1 %vm1089_vm12, %v1608_v63 }
 0x534   :  { %1469 = vmatprep.mubr.msk.bf16.mxu1 %vm1089_vm12, %v1609_v0 }
 0x53b   :  { %1470 = vmatmul.mubr.msk.bf16.gmra.mrb[12].mxu1 %vm1089_vm12, %v1610_v2 }
 0x53c   :  { %1473 = vmatprep.mubr.msk.bf16.mxu1 %vm1089_vm12, %v1611_v3 }
 0x543   :  { %1474 = vmatmul.mubr.msk.bf16.gmra.mrb[16].mxu1 %vm1089_vm12, %v1612_v4 }
 0x544   :  { %1489 = vmatprep.mubr.msk.bf16.mxu1 %vm1706_vm13, %v1705_v5 }
 0x606   :  { %v1467_v11 = vpop.f32.mrb[8].mxu1 }
 0x607   :  { %v1154_v12 = vadd.f32 %v1467_v11, %v1019_v8  ;;  %v1145_v13 = vpop.f32.mrb[9].mxu1 }
 0x608   :  { %v1146_v14 = vadd.f32 %v1145_v13, %v1009_v6  ;;  %v1468_v15 = vpop.f32.mrb[10].mxu1 }
 0x609   :  { %1660 = vtanh.f32 %v1154_v12  ;;  %v1157_v17 = vadd.f32 %v1468_v15, %v1024_v9  ;;  %v1148_v18 = vpop.f32.mrb[11].mxu1 }
 0x60a   :  { %1662 = vtanh.f32 %v1146_v14  ;;  %v1149_v20 = vadd.f32 %v1148_v18, %v1014_v7 }
 0x60b   :  { %1664 = vtanh.f32 %v1157_v17 }
 0x60c   :  { %1666 = vtanh.f32 %v1149_v20 }
 0x60e   :  { %v1471_v21 = vpop.f32.mrb[12].mxu1 }
 0x60f   :  { %v1170_v23 = vadd.f32 %v1471_v21, %v1039_v19  ;;  %v1161_v24 = vpop.f32.mrb[13].mxu1 }
 0x610   :  { %v1162_v26 = vadd.f32 %v1161_v24, %v1029_v10  ;;  %v1472_v1 = vpop.f32.mrb[14].mxu1 }
 0x611   :  { %1668 = vtanh.f32 %v1170_v23  ;;  %v1173_v27 = vadd.f32 %v1472_v1, %v1044_v22  ;;  %v1164_v28 = vpop.f32.mrb[15].mxu1 }
 0x612   :  { %1670 = vtanh.f32 %v1162_v26  ;;  %v1165_v29 = vadd.f32 %v1164_v28, %v1034_v16 }
 0x613   :  { %v1661_v30 = vpop.eup %1660  ;;  %1672 = vtanh.f32 %v1173_v27 }
 0x614   :  { %v1663_v31 = vpop.eup %1662  ;;  %1674 = vtanh.f32 %v1165_v29 }
 0x615   :  { %v1665_v32 = vpop.eup %1664 }
 0x616   :  { %v1667_v33 = vpop.eup %1666  ;;  %v1475_v35 = vpop.f32.mrb[16].mxu1  ;;  %v1207_v36 = vpack.c.bf16 %v1665_v32, %v1661_v30 }
 0x617   :  { %v1186_v37 = vadd.f32 %v1475_v35, %v1059_v34  ;;  %v1177_v38 = vpop.f32.mrb[17].mxu1  ;;  %v1206_v39 = vpack.c.bf16 %v1667_v33, %v1663_v31 }
 0x618   :  { %v1178_v40 = vadd.f32 %v1177_v38, %v1049_v25  ;;  %v1476_v41 = vpop.f32.mrb[18].mxu1 }
 0x619   :  { %v1180_v43 = vpop.f32.mrb[19].mxu1  ;;  %1478 = vmatpush3.bf16.msra.mxu1 %v1206_v39  ;;  %1676 = vtanh.f32 %v1186_v37 }
 0x61a   :  { %v1181_v44 = vadd.f32 %v1180_v43, %v1054_v42  ;;  %1479 = vmatprep.subr.bf16.mxu1 %v1705_v5  ;;  %1678 = vtanh.f32 %v1178_v40 }
 0x61b   :  { %v1669_v45 = vpop.eup %1668 }
 0x61c   :  { %v1671_v46 = vpop.eup %1670  ;;  %1680 = vtanh.f32 %v1181_v44 }
 0x61d   :  { %v1673_v47 = vpop.eup %1672  ;;  %1480 = vmatpush3.bf16.msra.mxu1 %v1207_v36 }
 0x61e   :  { %v1675_v48 = vpop.eup %1674  ;;  %1481 = vmatprep.subr.bf16.mxu1 %v1705_v5  ;;  %v1209_v49 = vpack.c.bf16 %v1673_v47, %v1669_v45 }
 0x61f   :  { %v1208_v50 = vpack.c.bf16 %v1675_v48, %v1671_v46 }
 0x621   :  { %1482 = vmatpush3.bf16.msra.mxu1 %v1208_v50 }
 0x622   :  { %1483 = vmatprep.subr.bf16.mxu1 %v1705_v5 }
 0x623   :  { %v1677_v51 = vpop.eup %1676 }
 0x624   :  { %v1679_v52 = vpop.eup %1678  ;;  %v1211_v55 = vpack.c.bf16 %v1677_v51, %v1677_v51 }
 0x625   :  { %1484 = vmatpush3.bf16.msra.mxu1 %v1209_v49 }
 0x626   :  { %v1681_v53 = vpop.eup %1680  ;;  %1485 = vmatprep.subr.bf16.mxu1 %v1705_v5  ;;  %v1232_v56 = vsel %vm260_vm0, %v1211_v55, 0 }
 0x627   :  { %v1210_v54 = vpack.c.bf16 %v1681_v53, %v1679_v52 }
 0x629   :  { %1486 = vmatpush3.bf16.msra.mxu1 %v1210_v54 }
 0x62a   :  { %1487 = vmatprep.subr.bf16.mxu1 %v1705_v5 }
 0x62d   :  { %1488 = vmatpush3.bf16.msra.mxu1 %v1232_v56 }
 0x630   :  { %1490 = vmatmul.mubr.msk.bf16.vlgmr.msra.gmra.mrb[20].mxu1 %vm1227_vm14, %v1613_v57 }
 0x703   :  { %v1268_v59 = vpop.f32.mrb[20].mxu1 }
 0x704   :  { %v1269_v60 = vadd.f32 %v1268_v59, %v1215_v58  ;;  %v1491_v61 = vpop.f32.mrb[21].mxu1 }
 0x705   :  { %v1271_v63 = vpop.f32.mrb[22].mxu1 }
 0x706   :  { %1276 = vst.msk [vmem:[%s2127_s3] sm:$0xff] %vm1275_vm15, %v1269_v60  ;;  %v1272_v0 = vadd.f32 %v1271_v63, %v1220_v62  ;;  %v1492_v2 = vpop.f32.mrb[23].mxu1 }
 0x708   :  { %1278 = vst.msk [vmem:[%s2127_s3 + $0x8] sm:$0x3] %vm1277_vm1, %v1272_v0 }

</bundles_post_ra>
